<compile_context>
chip_gen: v7x
topology: tpu7x:2x2x1
jax: 0.10.0
libtpu: 0.0.40
codegen_flags: <defaults>
</compile_context>

<pallas_src>
import jax
import jax.numpy as jnp
from jax.experimental import pallas as pl
from jax.experimental.pallas import tpu as pltpu

EPS = 1e-15

_LANE = 128                      # vreg lane width (last-dim tiling unit)
_SUBLANE = 8                     # f32 sublane count (2nd-to-last tiling unit)
_FAST_PATH_BYTES = 512 * 1024    # below this, XLA fusion beats kernel overhead


def _vmem_budget_and_limit():
    """Generation-aware VMEM sizing (v5e/v6e: 128 MiB, v7x: 64 MiB per TC)."""
    cap = None
    try:
        cap = getattr(pltpu.get_tpu_info(), "vmem_capacity_bytes", None)
    except Exception:
        cap = None
    if not cap:
        cap = 64 * 1024 * 1024                       # conservative: v7x per-TC VMEM
    budget = int(0.70 * cap)                         # block-sizing budget
    limit = min(int(0.85 * cap), cap - (8 << 20))    # scoped limit handed to Mosaic
    return budget, limit


def _dim_candidates(total, unit):
    """Legal block sizes for one dim, descending preference: the full extent,
    then divisors of `total` that are multiples of `unit` (TPU (8,128) rule)."""
    cands = [total]
    if total % unit == 0:
        for d in range(total - unit, 0, -unit):
            if total % d == 0:
                cands.append(d)
    return cands


def _pick_tiles(B, N, F, x_itemsize, w_itemsize, budget):
    """Largest (tb, tn, tf) block fitting the VMEM budget.  Preference:
    full-N reduction in one block, then the widest lane-dense feature tile,
    then the tallest batch tile."""
    tb_cands = _dim_candidates(B, _SUBLANE)   # cx/x 2nd-to-last-ish dim
    tn_cands = _dim_candidates(N, _LANE)      # w last dim AND x sublane dim
    tf_cands = _dim_candidates(F, _LANE)      # x/cx last dim (lane-dense output)

    def vmem_bytes(tb, tn, tf):
        x_blk = tb * tn * tf * x_itemsize
        w_blk = tb * tn * w_itemsize
        cx_blk = tb * tf * x_itemsize
        acc = tb * tf * 4                          # f32 scratch accumulator
        return 2 * (x_blk + w_blk + cx_blk) + acc  # in/out blocks double-buffered

    for tn in tn_cands:
        for tf in tf_cands:
            for tb in tb_cands:
                if vmem_bytes(tb, tn, tf) <= budget:
                    return tb, tn, tf
    raise ValueError(
        "MasterNode pooling: no legal block fits the VMEM budget "
        f"(B={B}, N={N}, F={F}, budget={budget}B). Tiling the node axis "
        "requires N to be a multiple of 128.")


def _split_for_megacore(B, F, tb, tf):
    """If the parallel (batch x feature) grid has a single step, split the
    feature tile (preferred: stays lane-dense) or the batch tile so v7x's two
    TensorCores both get work.  No-op when no smaller legal tile exists."""
    if (B // tb) * (F // tf) >= 2:
        return tb, tf
    for cand in _dim_candidates(F, _LANE):
        if cand < tf:
            return tb, cand
    for cand in _dim_candidates(B, _SUBLANE):
        if cand < tb:
            return cand, tf
    return tb, tf


def _masked_pool_kernel(w_ref, x_ref, cx_ref, acc_ref):
    """One grid step: (tb batch rows) x (tf feature lanes) x (tn node slice).

    w_ref:   (tb, tn)      normalized mask weights (f32)
    x_ref:   (tb, tn, tf)  node features
    cx_ref:  (tb, tf)      pooled output (revisited across the node axis)
    acc_ref: (tb, tf) f32  scratch accumulator
    """
    k = pl.program_id(2)

    @pl.when(k == 0)
    def _():
        acc_ref[...] = jnp.zeros_like(acc_ref)

    w = w_ref[...].astype(jnp.float32)
    x = x_ref[...].astype(jnp.float32)
    # VPU multiply + XLU sublane reduce; fully hidden under the x-tile DMA.
    acc_ref[...] += jnp.sum(w[..., None] * x, axis=1)

    @pl.when(k == pl.num_programs(2) - 1)
    def _():
        cx_ref[...] = acc_ref[...].astype(cx_ref.dtype)


def _masked_pool_cx(x, w, *, force_pallas=False):
    """c_x[b, f] = sum_n w[b, n] * x[b, n, f] (Pallas; tiny-input fast path)."""
    B, N, F = x.shape
    x_itemsize = jnp.dtype(x.dtype).itemsize

    if not force_pallas and B * N * F * x_itemsize < _FAST_PATH_BYTES:
        # A single-grid-step pallas_call pays fixed launch/DMA-setup overhead
        # that dominates tiny inputs; let XLA fuse the trivial case.
        return jnp.einsum("bn,bnf->bf", w.astype(jnp.float32),
                          x.astype(jnp.float32)).astype(x.dtype)

    budget, limit = _vmem_budget_and_limit()
    tb, tn, tf = _pick_tiles(B, N, F, x_itemsize,
                             jnp.dtype(w.dtype).itemsize, budget)
    tb, tf = _split_for_megacore(B, F, tb, tf)
    grid = (B // tb, F // tf, N // tn)

    return pl.pallas_call(
        _masked_pool_kernel,
        out_shape=jax.ShapeDtypeStruct((B, F), x.dtype),
        grid_spec=pltpu.PrefetchScalarGridSpec(
            num_scalar_prefetch=0,
            grid=grid,
            in_specs=[
                pl.BlockSpec((tb, tn), lambda i, j, k: (i, k)),
                # TODO(synk): sweep pipeline_mode=pl.Buffered(3) on the x spec
                # when the v7x budget forces small per-step x blocks.
                pl.BlockSpec((tb, tn, tf), lambda i, j, k: (i, k, j)),
            ],
            out_specs=pl.BlockSpec((tb, tf), lambda i, j, k: (i, j)),
            scratch_shapes=[pltpu.VMEM((tb, tf), jnp.float32)],
        ),
        compiler_params=pltpu.CompilerParams(
            # Batch and feature axes are independent (megacore shardable on
            # v7x); the node axis is the reduction -> "arbitrary" (innermost).
            dimension_semantics=("parallel", "parallel", "arbitrary"),
            vmem_limit_bytes=limit,
        ),
    )(w, x)


def master_node(x, adj, mask, *, force_pallas=False):
    """JAX/Pallas equivalent of MasterNode.forward(x, adj, mask)."""
    B, N, F = x.shape
    assert mask.shape == (B, N), (mask.shape, x.shape)
    del adj  # unused by the forward pass (kept only for signature parity)

    # m_cn = mask / (sum_N mask + EPS): B*N elements, trivially cheap -> plain
    # JAX.  Hoisting it out of the kernel keeps both parallel grid axes free
    # for megacore and makes the Pallas kernel a pure weighted reduction.
    mask_f32 = mask.astype(jnp.float32)
    w = mask_f32 / (jnp.sum(mask_f32, axis=-1, keepdims=True) + EPS)   # (B, N)

    c_x = _masked_pool_cx(x, w, force_pallas=force_pallas).reshape(B, 1, F)

    # Force a float dtype for m_cn so bool/int masks don't truncate the weights.
    m_cn_dtype = mask.dtype if jnp.issubdtype(mask.dtype, jnp.floating) else jnp.float32
    m_cn = w.astype(m_cn_dtype).reshape(B, 1, N)
    m_nc = mask[..., None]                          # (B, N, 1)  pure reshape
    c_adj = jnp.ones((B, 1, 1), dtype=x.dtype)      # x.new_ones([B, 1, 1])
    loss = jnp.zeros((1,), dtype=x.dtype)           # x.new_zeros(1)
    return c_x, c_adj, m_nc, m_cn, loss


if __name__ == "__main__":
    key = jax.random.PRNGKey(0)
    kx, ka, km = jax.random.split(key, 3)

    B, N, F = 2, 16, 32
    x = jax.random.normal(kx, (B, N, F), dtype=jnp.float32)
    adj = (jax.random.uniform(ka, (B, N, N)) > 0.5).astype(jnp.float32)
    mask = (jax.random.uniform(km, (B, N)) > 0.3).astype(jnp.float32)

    # Force the Pallas path so the kernel is exercised even at smoke-test size.
    outs = master_node(x, adj, mask, force_pallas=True)
    outs = jax.block_until_ready(outs)
    c_x, c_adj, m_nc, m_cn, loss = outs

    # Auto path (tiny-input fast path) must agree as well.
    c_x_auto = jax.block_until_ready(master_node(x, adj, mask)[0])

    # Plain-JAX reference (== torch semantics).
    m_nc_ref = mask[..., None]
    m_cn_raw = jnp.swapaxes(m_nc_ref, -2, -1)
    m_cn_ref = m_cn_raw / (jnp.sum(m_cn_raw, axis=-1, keepdims=True) + EPS)
    c_x_ref = jnp.matmul(m_cn_ref, x)

    assert c_x.shape == (B, 1, F) and c_x.dtype == x.dtype
    assert m_cn.shape == (B, 1, N) and jnp.issubdtype(m_cn.dtype, jnp.floating)
    assert bool(jnp.allclose(c_x, c_x_ref, atol=1e-5, rtol=1e-5))
    assert bool(jnp.allclose(c_x_auto, c_x_ref, atol=1e-5, rtol=1e-5))
    assert bool(jnp.allclose(m_cn, m_cn_ref, atol=1e-6, rtol=1e-6))
    assert bool(jnp.array_equal(m_nc, m_nc_ref))
    assert bool(jnp.array_equal(c_adj, jnp.ones((B, 1, 1), jnp.float32)))
    assert bool(jnp.array_equal(loss, jnp.zeros((1,), jnp.float32)))

    print("KERNEL_OK")
</pallas_src>

<mosaic_0001>
module attributes {stable_mosaic.version = 11 : i64} {
  func.func @_masked_pool_kernel(%arg0: i32, %arg1: i32, %arg2: i32, %arg3: memref<2x16xf32, #tpu.memory_space<vmem>>, %arg4: memref<2x16x32xf32, #tpu.memory_space<vmem>>, %arg5: memref<2x32xf32, #tpu.memory_space<vmem>>, %arg6: memref<2x32xf32, #tpu.memory_space<vmem>>) attributes {dimension_semantics = [#tpu.dimension_semantics<parallel>, #tpu.dimension_semantics<parallel>, #tpu.dimension_semantics<arbitrary>], iteration_bounds = array<i64: 1, 1, 1>, scalar_prefetch = 0 : i64, scratch_operands = 1 : i64, tpu.core_type = #tpu.core_type<tc>, window_params = [{transform_indices = @transform_0, window_bounds = array<i64: 2, 16>}, {transform_indices = @transform_1, window_bounds = array<i64: 2, 16, 32>}, {transform_indices = @transform_2, window_bounds = array<i64: 2, 32>}]} {
    %c0_i32 = arith.constant 0 : i32
    %0 = arith.cmpi eq, %arg2, %c0_i32 : i32
    %1 = arith.extui %0 : i1 to i32
    %c0_i32_0 = arith.constant 0 : i32
    %2 = arith.cmpi ne, %1, %c0_i32_0 : i32
    scf.if %2 {
      %cst_11 = arith.constant 0.000000e+00 : f32
      %15 = vector.broadcast %cst_11 : f32 to vector<2x32xf32>
      %c0_12 = arith.constant 0 : index
      %c0_13 = arith.constant 0 : index
      %16 = vector.load %arg6[%c0_12, %c0_13] : memref<2x32xf32, #tpu.memory_space<vmem>>, vector<2x32xf32>
      tpu.vector_store %arg6[%c0_12, %c0_13], %15 {strides = array<i32>} : memref<2x32xf32, #tpu.memory_space<vmem>>, vector<2x32xf32>,
    } else {
    }
    %c0 = arith.constant 0 : index
    %c0_1 = arith.constant 0 : index
    %3 = vector.load %arg3[%c0, %c0_1] : memref<2x16xf32, #tpu.memory_space<vmem>>, vector<2x16xf32>
    %c0_2 = arith.constant 0 : index
    %c0_3 = arith.constant 0 : index
    %c0_4 = arith.constant 0 : index
    %4 = vector.load %arg4[%c0_2, %c0_3, %c0_4] : memref<2x16x32xf32, #tpu.memory_space<vmem>>, vector<2x16x32xf32>
    %c0_5 = arith.constant 0 : index
    %c0_6 = arith.constant 0 : index
    %5 = vector.load %arg6[%c0_5, %c0_6] : memref<2x32xf32, #tpu.memory_space<vmem>>, vector<2x32xf32>
    %6 = vector.shape_cast %3 : vector<2x16xf32> to vector<2x16x1xf32>
    %7 = vector.broadcast %6 : vector<2x16x1xf32> to vector<2x16x32xf32>
    %8 = arith.mulf %7, %4 : vector<2x16x32xf32>
    %cst = arith.constant dense<0.000000e+00> : vector<2x32xf32>
    %9 = vector.multi_reduction <add>, %8, %cst [1] : vector<2x16x32xf32> to vector<2x32xf32>
    %10 = arith.addf %5, %9 : vector<2x32xf32>
    %c0_7 = arith.constant 0 : index
    %c0_8 = arith.constant 0 : index
    %11 = vector.load %arg6[%c0_7, %c0_8] : memref<2x32xf32, #tpu.memory_space<vmem>>, vector<2x32xf32>
    tpu.vector_store %arg6[%c0_7, %c0_8], %10 {strides = array<i32>} : memref<2x32xf32, #tpu.memory_space<vmem>>, vector<2x32xf32>,
    %c0_i32_9 = arith.constant 0 : i32
    %12 = arith.cmpi eq, %arg2, %c0_i32_9 : i32
    %13 = arith.extui %12 : i1 to i32
    %c0_i32_10 = arith.constant 0 : i32
    %14 = arith.cmpi ne, %13, %c0_i32_10 : i32
    scf.if %14 {
      %c0_11 = arith.constant 0 : index
      %c0_12 = arith.constant 0 : index
      %15 = vector.load %arg6[%c0_11, %c0_12] : memref<2x32xf32, #tpu.memory_space<vmem>>, vector<2x32xf32>
      %c0_13 = arith.constant 0 : index
      %c0_14 = arith.constant 0 : index
      %16 = vector.load %arg5[%c0_13, %c0_14] : memref<2x32xf32, #tpu.memory_space<vmem>>, vector<2x32xf32>
      tpu.vector_store %arg5[%c0_13, %c0_14], %15 {strides = array<i32>} : memref<2x32xf32, #tpu.memory_space<vmem>>, vector<2x32xf32>,
    } else {
    }
    return
  }
  func.func @transform_0(%arg0: i32, %arg1: i32, %arg2: i32) -> (i32, i32) {
    %c0_i32 = arith.constant 0 : i32
    return %arg0, %arg2 : i32, i32
  }
  func.func @transform_1(%arg0: i32, %arg1: i32, %arg2: i32) -> (i32, i32, i32) {
    %c0_i32 = arith.constant 0 : i32
    return %arg0, %arg2, %arg1 : i32, i32, i32
  }
  func.func @transform_2(%arg0: i32, %arg1: i32, %arg2: i32) -> (i32, i32) {
    %c0_i32 = arith.constant 0 : i32
    return %arg0, %arg1 : i32, i32
  }
}

</mosaic_0001>

<bundles_post_ra>
// kernel: tpu_custom_call.1
= control target key start
LH: loop header
LB: loop body
LE: loop exit
PB: predicated region body
PF: predicated region fallthrough
CT: control target
= control target key end

     0   :  { %7 = vsyncpa [#allocation4], 0  ;;  %s269_s0 = inlined_call_operand.hbm [shape: f32[2,16], index: 0, kind: input, shape index: {}]   ;;  %s270_s1 = inlined_call_operand.hbm [shape: f32[2,16,32], index: 1, kind: input, shape index: {}]   ;;  %s271_s2 = inlined_call_operand.hbm [shape: f32[2,32], index: 2, kind: output, shape index: {}]  }
   0x1   :  { %8 = vsyncpa [#allocation7], 0 }
   0x2   :  { %9 = vsyncpa [#allocation5], 0  ;;  %s202_s9 = smov [#allocation3]   ;;  %s203_s11 = smov [#allocation6]  }
   0x3   :  { %s16_s10 = sshll.u32 %s202_s9, 4  ;;  %s25_s12 = sshll.u32 %s203_s11, 4  ;;  %s17_s10 = int_to_ptr.vmem [resolvable:$true] %s16_s10  ;;  %s223_s12 = int_to_ptr.vmem [resolvable:$true] %s25_s12 }
   0x4   :  { %s130_s15 = scalar_lea.hbm %s269_s0, 32 }
   0x5   :  { %p131_p0 = scmp.ne.s32.totalorder %s269_s0, %s130_s15  ;;  %p134_p1 = scmp.lt.u32.totalorder %s130_s15, %s269_s0 }
   0x7   :  { %p136_p2 = pnand %p134_p1, %p131_p0 }
   0x9   :  { %139 = shalt.err (!%p136_p2)
}
   0xa   :  { %s140_s20 = scalar_lea.vmem %s17_s10, 32  ;;  %p145_p4 = scmp.lt.s32.totalorder %s17_s10, %s17_s10 }
   0xb   :  { %p141_p3 = scmp.ne.s32.totalorder %s17_s10, %s140_s20  ;;  %p146_p5 = scmp.lt.s32.totalorder %s140_s20, %s140_s20 }
   0xd   :  { %p147_p6 = por %p146_p5, %p145_p4 }
   0xf   :  { %p148_p7 = pnand %p147_p6, %p141_p3 }
  0x11   :  { %151 = shalt.err (!%p148_p7)
}
  0x12   :  { %19 = dma.hbm_to_vmem [thread:$0]  %s269_s0, 32, %s17_s10, [#allocation4]  }
  0x13   :  { %s152_s25 = scalar_lea.hbm %s270_s1, 512 }
  0x14   :  { %p153_p8 = scmp.ne.s32.totalorder %s270_s1, %s152_s25  ;;  %p156_p9 = scmp.lt.u32.totalorder %s152_s25, %s270_s1 }
  0x16   :  { %p158_p10 = pnand %p156_p9, %p153_p8 }
  0x18   :  { %161 = shalt.err (!%p158_p10)
}
  0x19   :  { %s162_s30 = scalar_lea.vmem %s223_s12, 512  ;;  %p167_p12 = scmp.lt.s32.totalorder %s223_s12, %s223_s12 }
  0x1a   :  { %p163_p11 = scmp.ne.s32.totalorder %s223_s12, %s162_s30  ;;  %p168_p13 = scmp.lt.s32.totalorder %s162_s30, %s162_s30 }
  0x1c   :  { %p169_p0 = por %p168_p13, %p167_p12 }
  0x1e   :  { %p170_p1 = pnand %p169_p0, %p163_p11 }
  0x20   :  { %173 = shalt.err (!%p170_p1)
}
  0x21   :  { %s204_s0 = smov 128   ;;  %s205_s3 = smov 8  }
  0x22   :  { %31 = dma.hbm_to_vmem [thread:$0]  %s270_s1, 512, %s223_s12, [#allocation7], %s204_s0, %s204_s0, %s205_s3  }
  0x23   :  { %196 = dma.done.wait [#allocation4], 32  }
  0x24   :  { %197 = vsyncadd [#allocation4], 4294967264 }
  0x25   :  { %198 = dma.done.wait [#allocation7], 512  }
  0x26   :  { %199 = vsyncadd [#allocation7], 4294966784  ;;  %v50_v0 = vlaneseq  ;;  %v44_v4 = vld [vmem:[#allocation3] sm:$0x3]  ;;  %vm42_vm0 = vcmask 254976   ;;  %v206_v7 = vmov 0.0  }
  0x27   :  { %43 = vst.msk [vmem:[#allocation2] sm:$0x3] %vm42_vm0, %v206_v7  ;;  %v47_v8 = vld [vmem:[#allocation6 + $0x10] sm:$0xff]  ;;  %v45_v10 = vld [vmem:[#allocation6] sm:$0xff]  ;;  %v48_v12 = vld [vmem:[#allocation6 + $0x18] sm:$0xff]  ;;  %vm76_vm1 = vcmask 261120  }
  0x28   :  { %v51_v1 = vshrl.u32 %v50_v0, 7  ;;  %v46_v13 = vld [vmem:[#allocation6 + $0x8] sm:$0xff]  ;;  %vm97_vm2 = vcmask 1041409   ;;  %s207_s1 = smov [#allocation8]  }
  0x29   :  { %s114_s6 = sshll.u32 %s207_s1, 4  ;;  %s115_s6 = int_to_ptr.vmem [resolvable:$true] %s114_s6 }
  0x2a   :  { %v63_v2 = vsub.s32 1, %v51_v1  ;;  %v52_v3 = vsub.s32 0, %v51_v1  ;;  %s174_s7 = scalar_lea.vmem %s115_s6, 32  ;;  %p179_p3 = scmp.lt.s32.totalorder %s115_s6, %s115_s6 }
  0x2b   :  { %p175_p2 = scmp.ne.s32.totalorder %s115_s6, %s174_s7  ;;  %p180_p4 = scmp.lt.s32.totalorder %s174_s7, %s174_s7 }
  0x2c   :  { %v64_v5 = vrot.slane %v44_v4, %v63_v2  ;;  %v53_v6 = vrot.slane %v44_v4, %v52_v3 }
  0x2d   :  { %p181_p5 = por %p180_p4, %p179_p3 }
  0x2e   :  { %66 = vbcast.lane.b32.xlu1 %v64_v5, 256  ;;  %55 = vbcast.lane.b32.xlu0 %v53_v6, 256  ;;  %v49_v38 = vld [vmem:[#allocation2] sm:$0x3] }
  0x2f   :  { %p182_p6 = pnand %p181_p5, %p175_p2 }
  0x32   :  { %70 = vbcast.lane.b32.xlu1 %v64_v5, 264  ;;  %59 = vbcast.lane.b32.xlu0 %v53_v6, 264 }
  0xa0   :  { %v67_v9 = vpop.permute.xlu1 %66  ;;  %v56_v11 = vpop.permute.xlu0 %55 }
  0xa1   :  { %v74_v14 = vmul.f32 %v67_v9, %v47_v8  ;;  %v72_v15 = vmul.f32 %v56_v11, %v45_v10 }
  0xa3   :  { %v86_v20 = vsel %vm76_vm1, %v74_v14, 0.0  ;;  %v77_v21 = vsel %vm76_vm1, %v72_v15, 0.0 }
  0xa4   :  { %v71_v16 = vpop.permute.xlu1 %70  ;;  %v60_v17 = vpop.permute.xlu0 %59 }
  0xa5   :  { %v75_v18 = vmul.f32 %v71_v16, %v48_v12  ;;  %v73_v19 = vmul.f32 %v60_v17, %v46_v13 }
  0xa7   :  { %v87_v22 = vsel %vm76_vm1, %v75_v18, 0.0  ;;  %v78_v23 = vsel %vm76_vm1, %v73_v19, 0.0 }
  0xa8   :  { %v88_v24 = vadd.f32 %v87_v22, %v86_v20  ;;  %v79_v25 = vadd.f32 %v78_v23, %v77_v21 }
  0xaa   :  { %v89_v26 = vrot.slane %v88_v24, 4  ;;  %v80_v27 = vrot.slane %v79_v25, 4 }
  0xac   :  { %v90_v28 = vadd.f32 %v89_v26, %v88_v24  ;;  %v81_v29 = vadd.f32 %v80_v27, %v79_v25 }
  0xae   :  { %v91_v30 = vrot.slane %v90_v28, 2  ;;  %v82_v31 = vrot.slane %v81_v29, 2 }
  0xb0   :  { %v92_v32 = vadd.f32 %v91_v30, %v90_v28  ;;  %v83_v33 = vadd.f32 %v82_v31, %v81_v29 }
  0xb2   :  { %v93_v34 = vrot.slane %v92_v32, 1  ;;  %v84_v35 = vrot.slane %v83_v33, 1 }
  0xb4   :  { %v94_v36 = vadd.f32 %v93_v34, %v92_v32  ;;  %v85_v37 = vadd.f32 %v84_v35, %v83_v33 }
  0xb6   :  { %v98_v39 = vsel %vm97_vm2, %v94_v36, %v85_v37 }
  0xb7   :  { %v100_v40 = vadd.f32 %v98_v39, %v49_v38 }
  0xb9   :  { %102 = vst.msk [vmem:[#allocation2] sm:$0x3] %vm42_vm0, %v100_v40 }
  0xc0   :  { %v106_v41 = vld [vmem:[#allocation2] sm:$0x3] }
  0xc1   :  { %107 = vst.msk [vmem:[#allocation8] sm:$0x3] %vm42_vm0, %v106_v41 }
  0xc2   :  { %185 = shalt.err (!%p182_p6)
}
  0xc3   :  { %s186_s10 = scalar_lea.hbm %s271_s2, 32 }
  0xc4   :  { %p187_p7 = scmp.ne.s32.totalorder %s271_s2, %s186_s10  ;;  %p190_p8 = scmp.lt.u32.totalorder %s186_s10, %s271_s2 }
  0xc6   :  { %p192_p9 = pnand %p190_p8, %p187_p7 }
  0xc8   :  { %195 = shalt.err (!%p192_p9)
}
  0xc9   :  { %117 = dma.vmem_to_hbm [thread:$0]  %s115_s6, 32, %s271_s2, [#allocation5]  }
  0xca   :  { %200 = dma.done.wait [#allocation5], 32  }
  0xcb   :  { %201 = vsyncadd [#allocation5], 4294967264 }
  0xcc   :  { %121 = vsyncpa [#allocation4], 1 }
  0xcd   :  { %122 = vsyncpa [#allocation7], 1 }
  0xce   :  { %123 = vsyncpa [#allocation5], 1 }

</bundles_post_ra>
